<compile_context>
chip_gen: v5e
topology: v5e:2x2
jax: 0.10.0
libtpu: 0.0.40
codegen_flags: <defaults>
</compile_context>

<pallas_src>
import jax
import jax.numpy as jnp
from jax import lax
from jax.experimental import pallas as pl
from jax.experimental.pallas import tpu as pltpu

_NT_DIMS = (((1,), (1,)), ((), ()))   # contract last dim of both operands (A @ B^T)
_HEAD_ROWS = 8                        # 4 logit rows padded to a full sublane tile


def _classifier_kernel(x_ref, w_ref, b_ref, o_ref):
    """One row-tile of the fused classifier.

    x_ref: (tm, H)   activation row tile (streamed, caller dtype: bf16 or f32)
    w_ref: (8, H)    fused weights (start0, start1, end0, end1, 0, 0, 0, 0)
    b_ref: (8, 1)    fused bias (f32)
    o_ref: (8, tm)   lane-dense transposed logits (heads on sublanes, rows on lanes)
    """
    y = lax.dot_general(w_ref[...], x_ref[...], _NT_DIMS,
                        preferred_element_type=jnp.float32)        # (8, tm) f32
    o_ref[...] = (y + b_ref[...]).astype(o_ref.dtype)


def _vmem_capacity_bytes():
    """Per-core VMEM capacity; conservative (v7x-sized) fallback if unavailable."""
    try:
        return int(pltpu.get_tpu_info().vmem_capacity_bytes)
    except Exception:
        return 64 * 1024 * 1024


def _pick_row_tile(M_arr, H, itemsize):
    """Byte-targeted, generation-aware row tile.

    M_arr is the row count of the array actually handed to pallas_call
    (guaranteed >= 128 by the wrapper)."""
    vmem_cap = _vmem_capacity_bytes()
    if vmem_cap >= 96 * 1024 * 1024:            # v5e / v6e: 128 MiB VMEM
        tile_target = 32 * 1024 * 1024
        tm_cap = 16384
        limit_cap = 96 * 1024 * 1024
    else:                                        # v7x: 64 MiB VMEM per TensorCore
        tile_target = 16 * 1024 * 1024
        tm_cap = 8192
        limit_cap = 48 * 1024 * 1024

    tm = tile_target // (H * itemsize)
    tm = max(128, min(tm_cap, (tm // 128) * 128))
    # A block never exceeds the array along rows (ragged tail handled by a
    # partial last grid block).
    tm = min(tm, (M_arr // 128) * 128)
    # Keep >= 4 grid steps when there is enough work, so v7x's two TensorCores
    # each get >= 2 steps on the "parallel" row axis (preserves per-core
    # DMA/compute overlap).
    if M_arr >= 4 * 128:
        tm = min(tm, max(128, (M_arr // 4) // 128 * 128))
    tm = max(tm, 128)

    tile_bytes = tm * H * itemsize
    # Double-buffered x stream + (tiny) output/weight buffers + headroom.
    vmem_limit = int(min(limit_cap,
                         max(32 * 1024 * 1024, 2 * tile_bytes + (8 << 20))))
    return tm, vmem_limit


def classifier_forward(x, w_start, b_start, w_end, b_end):
    """x: [B, S, H] (bf16 or f32 -- streamed as-is, accumulated in f32).
    w_start/w_end: [2, H] (PyTorch nn.Linear.weight layout).  b_start/b_end: [2].
    Returns (start_logits, end_logits), each [B, S, 2] f32.
    Dropout(p=0.0) is the identity and is omitted."""
    B, S, H = x.shape
    M = B * S
    stream_dtype = x.dtype
    itemsize = jnp.dtype(stream_dtype).itemsize

    x2d = x.reshape(M, H)
    # Only the degenerate tiny-M case pads (to one lane tile).  For real
    # workloads (M >= 128) there is NO pad copy; ragged M is handled by a
    # partial last block via a pl.cdiv grid.
    M_arr = max(M, 128)
    if M_arr != M:
        x2d = jnp.pad(x2d, ((0, M_arr - M), (0, 0)))

    tm, vmem_limit = _pick_row_tile(M_arr, H, itemsize)

    # Fuse both heads into one matmul; pad head rows 4 -> 8 (full sublane tile).
    # Weight matches the streaming dtype (tiny, resident); bias stays f32 so the
    # add happens on the f32 accumulator.
    w_fused = jnp.concatenate([w_start, w_end], axis=0).astype(stream_dtype)   # (4, H)
    w_fused = jnp.pad(w_fused, ((0, _HEAD_ROWS - 4), (0, 0)))                  # (8, H)
    b_fused = jnp.concatenate([b_start, b_end], axis=0).astype(jnp.float32)    # (4,)
    b_fused = jnp.pad(b_fused, ((0, _HEAD_ROWS - 4),)).reshape(_HEAD_ROWS, 1)  # (8, 1)

    grid_spec = pltpu.PrefetchScalarGridSpec(
        num_scalar_prefetch=0,
        grid=(pl.cdiv(M_arr, tm),),
        in_specs=[
            pl.BlockSpec((tm, H), lambda i: (i, 0)),               # x row tile (streamed)
            pl.BlockSpec((_HEAD_ROWS, H), lambda i: (0, 0)),       # fused weight (resident)
            pl.BlockSpec((_HEAD_ROWS, 1), lambda i: (0, 0)),       # fused bias (resident)
        ],
        out_specs=pl.BlockSpec((_HEAD_ROWS, tm), lambda i: (0, i)),  # lane-dense output
    )

    out_t = pl.pallas_call(
        _classifier_kernel,
        out_shape=jax.ShapeDtypeStruct((_HEAD_ROWS, M_arr), jnp.float32),
        grid_spec=grid_spec,
        compiler_params=pltpu.CompilerParams(
            dimension_semantics=("parallel",),
            vmem_limit_bytes=vmem_limit),
    )(x2d, w_fused, b_fused)

    # Layout plumbing only (tiny [4, M] slab): slice valid rows/cols, transpose.
    logits = out_t[:4, :M].T                       # (M, 4)
    start_logits = logits[:, 0:2].reshape(B, S, 2)
    end_logits = logits[:, 2:4].reshape(B, S, 2)
    return start_logits, end_logits


if __name__ == "__main__":
    # Small shapes consistent with the module: batch=2, seq=8, hidden=128
    # (lane-aligned hidden size, as in real BERT configs).
    B, S, H = 2, 8, 128
    key = jax.random.PRNGKey(0)
    kx, kws, kbs, kwe, kbe = jax.random.split(key, 5)

    x_f32 = jax.random.normal(kx, (B, S, H), dtype=jnp.float32)
    # nn.Linear parameter layout: weight [2, H], bias [2].
    w_start = jax.random.normal(kws, (2, H), dtype=jnp.float32) * 0.02
    b_start = jax.random.normal(kbs, (2,), dtype=jnp.float32) * 0.02
    w_end = jax.random.normal(kwe, (2, H), dtype=jnp.float32) * 0.02
    b_end = jax.random.normal(kbe, (2,), dtype=jnp.float32) * 0.02

    fwd = jax.jit(classifier_forward)

    # --- bf16 activation path (what the encoder hands us; half the DMA bytes) ---
    x_bf16 = x_f32.astype(jnp.bfloat16)
    start_bf, end_bf = fwd(x_bf16, w_start, b_start, w_end, b_end)
    jax.block_until_ready((start_bf, end_bf))

    xr = x_bf16.astype(jnp.float32)
    ws_r = w_start.astype(jnp.bfloat16).astype(jnp.float32)
    we_r = w_end.astype(jnp.bfloat16).astype(jnp.float32)
    ref_start_bf = xr @ ws_r.T + b_start
    ref_end_bf = xr @ we_r.T + b_end
    assert start_bf.shape == (B, S, 2) and end_bf.shape == (B, S, 2)
    assert jnp.allclose(start_bf, ref_start_bf, atol=2e-2, rtol=2e-2)
    assert jnp.allclose(end_bf, ref_end_bf, atol=2e-2, rtol=2e-2)

    # --- f32 activation path (same kernel, tighter tolerance) ---
    start_f, end_f = fwd(x_f32, w_start, b_start, w_end, b_end)
    jax.block_until_ready((start_f, end_f))
    ref_start = x_f32 @ w_start.T + b_start
    ref_end = x_f32 @ w_end.T + b_end
    assert jnp.allclose(start_f, ref_start, atol=1e-4, rtol=1e-4)
    assert jnp.allclose(end_f, ref_end, atol=1e-4, rtol=1e-4)

    print("KERNEL_OK")
</pallas_src>

<mosaic_0001>
module attributes {stable_mosaic.version = 11 : i64} {
  func.func @_classifier_kernel(%arg0: i32, %arg1: memref<128x128xbf16, #tpu.memory_space<vmem>>, %arg2: memref<8x128xbf16, #tpu.memory_space<vmem>>, %arg3: memref<8x1xf32, #tpu.memory_space<vmem>>, %arg4: memref<8x128xf32, #tpu.memory_space<vmem>>) attributes {dimension_semantics = [#tpu.dimension_semantics<parallel>], iteration_bounds = array<i64: 1>, scalar_prefetch = 0 : i64, scratch_operands = 0 : i64, tpu.core_type = #tpu.core_type<tc>, window_params = [{transform_indices = @transform_0, window_bounds = array<i64: 128, 128>}, {pipeline_mode = #tpu.pipeline_mode<synchronous>, transform_indices = @transform_1, window_bounds = array<i64: 8, 128>}, {pipeline_mode = #tpu.pipeline_mode<synchronous>, transform_indices = @transform_2, window_bounds = array<i64: 8, 1>}, {transform_indices = @transform_3, window_bounds = array<i64: 8, 128>}]} {
    %c0 = arith.constant 0 : index
    %c0_0 = arith.constant 0 : index
    %0 = vector.load %arg2[%c0, %c0_0] : memref<8x128xbf16, #tpu.memory_space<vmem>>, vector<8x128xbf16>
    %c0_1 = arith.constant 0 : index
    %c0_2 = arith.constant 0 : index
    %1 = vector.load %arg1[%c0_1, %c0_2] : memref<128x128xbf16, #tpu.memory_space<vmem>>, vector<128x128xbf16>
    %cst = arith.constant dense<0.000000e+00> : vector<8x128xf32>
    %2 = tpu.matmul %0, %1, %cst {dimension_numbers = #tpu.dot_dimension_numbers<[1], [1], [0], [0], [0, 0, 1, 0], [], []>} : vector<8x128xbf16>, vector<128x128xbf16>, vector<8x128xf32> -> vector<8x128xf32>
    %c0_3 = arith.constant 0 : index
    %c0_4 = arith.constant 0 : index
    %3 = vector.load %arg3[%c0_3, %c0_4] : memref<8x1xf32, #tpu.memory_space<vmem>>, vector<8x1xf32>
    %4 = vector.broadcast %3 : vector<8x1xf32> to vector<8x128xf32>
    %5 = arith.addf %2, %4 : vector<8x128xf32>
    %c0_5 = arith.constant 0 : index
    %c0_6 = arith.constant 0 : index
    %6 = vector.load %arg4[%c0_5, %c0_6] : memref<8x128xf32, #tpu.memory_space<vmem>>, vector<8x128xf32>
    tpu.vector_store %arg4[%c0_5, %c0_6], %5 {strides = array<i32>} : memref<8x128xf32, #tpu.memory_space<vmem>>, vector<8x128xf32>,
    return
  }
  func.func @transform_0(%arg0: i32) -> (i32, i32) {
    %c0_i32 = arith.constant 0 : i32
    %c0_i32_0 = arith.constant 0 : i32
    return %arg0, %c0_i32 : i32, i32
  }
  func.func @transform_1(%arg0: i32) -> (i32, i32) {
    %c0_i32 = arith.constant 0 : i32
    %c0_i32_0 = arith.constant 0 : i32
    %c0_i32_1 = arith.constant 0 : i32
    return %c0_i32, %c0_i32_0 : i32, i32
  }
  func.func @transform_2(%arg0: i32) -> (i32, i32) {
    %c0_i32 = arith.constant 0 : i32
    %c0_i32_0 = arith.constant 0 : i32
    %c0_i32_1 = arith.constant 0 : i32
    return %c0_i32, %c0_i32_0 : i32, i32
  }
  func.func @transform_3(%arg0: i32) -> (i32, i32) {
    %c0_i32 = arith.constant 0 : i32
    %c0_i32_0 = arith.constant 0 : i32
    return %c0_i32, %arg0 : i32, i32
  }
}

</mosaic_0001>

<bundles_post_ra>
// kernel: classifier_forward.1
= control target key start
LH: loop header
LB: loop body
LE: loop exit
PB: predicated region body
PF: predicated region fallthrough
CT: control target
= control target key end

     0   :  { %v145_v6 = vmov 0   ;;  %s199_s0 = inlined_call_operand.vmem [shape: bf16[128,128], index: 0, kind: input, shape index: {}]   ;;  %s200_s2 = inlined_call_operand.vmem [shape: f32[8,1], index: 2, kind: input, shape index: {}]   ;;  %s201_s1 = inlined_call_operand.vmem [shape: bf16[8,128], index: 1, kind: input, shape index: {}]   ;;  %s202_s3 = inlined_call_operand.vmem [shape: f32[8,128], index: 3, kind: output, shape index: {}]  }
   0x1   :  { %v142_v0 = vld [vmem:[%s199_s0 + $0x38] sm:$0xff]  ;;  %v141_v1 = vld [vmem:[%s199_s0 + $0x30] sm:$0xff]  ;;  %v140_v2 = vld [vmem:[%s199_s0 + $0x28] sm:$0xff]  ;;  %144 = vset.pattern.permute.xlu0 %v145_v6 }
   0x2   :  { %85 = vmatpush.bf16.xpose.msra.mxu0 %v142_v0  ;;  %v139_v3 = vld [vmem:[%s199_s0 + $0x20] sm:$0xff]  ;;  %v138_v4 = vld [vmem:[%s199_s0 + $0x18] sm:$0xff]  ;;  %v137_v7 = vld [vmem:[%s199_s0 + $0x10] sm:$0xff] }
   0x3   :  { %v31_v5 = vld [vmem:[%s200_s2] sm:$0xff]  ;;  %v136_v8 = vld [vmem:[%s199_s0 + $0x8] sm:$0xff] }
   0x4   :  { %34 = vperm.xlu0 %144, %v31_v5   ;;  %v135_v9 = vld [vmem:[%s199_s0] sm:$0xff] }
   0x5   :  { %v14_v10 = vld [vmem:[%s201_s1] sm:$0xf] }
   0xa   :  { %86 = vmatpush.bf16.xpose.msra.mxu0 %v141_v1 }
  0x12   :  { %87 = vmatpush.bf16.xpose.msra.mxu0 %v140_v2 }
  0x1a   :  { %88 = vmatpush.bf16.xpose.msra.mxu0 %v139_v3 }
  0x22   :  { %89 = vmatpush.bf16.xpose.msra.mxu0 %v138_v4 }
  0x2a   :  { %90 = vmatpush.bf16.xpose.msra.mxu0 %v137_v7 }
  0x32   :  { %91 = vmatpush.bf16.xpose.msra.mxu0 %v136_v8 }
  0x3a   :  { %92 = vmatpush.bf16.xpose.msra.mxu0 %v135_v9 }
  0x41   :  { %93 = vmatmul.bf16.vlgmr.msra.gmra.mxu0 %v14_v10 }
  0x76   :  { %v35_v11 = vpop.permute.xlu0 %34 }
  0xbe   :  { %v94_v12 = vpop.f32.mrf.mxu0 }
  0xbf   :  { %v95_v13 = vadd.f32 %v94_v12, %v35_v11 }
  0xc1   :  { %98 = vst [vmem:[%s202_s3] sm:$0xff] %v95_v13 }
  0xc6   :  { %v96_v14 = vpop.f32.mrf.mxu0 }

</bundles_post_ra>
